<compile_context>
chip_gen: v6e
topology: v6e:2x2x1
jax: 0.10.0
libtpu: 0.0.40
codegen_flags: <defaults>
</compile_context>

<pallas_src>
import functools

import jax
import jax.numpy as jnp
from jax import lax
from jax.experimental import pallas as pl
from jax.experimental.pallas import tpu as pltpu


# ----------------------------------------------------------------------------
# Kernel
# ----------------------------------------------------------------------------
def _roi_align_1x1_kernel(boxes_ref, feats_ref, out_ref, w_scratch,
                          *, scale, H, W, HW, transpose_out):
    # boxes_ref : (1, 4, Lp) f32        feats_ref : (1, TC, HW) feats dtype
    # out_ref   : (1, TC, Lp) or (1, Lp, TC)
    # w_scratch : (HW, Lp) in feats dtype (persists across channel tiles)
    ct = pl.program_id(1)

    @pl.when(ct == 0)
    def _build_weights():
        boxes = boxes_ref[0]                                   # (4, Lp)
        x1 = boxes[0:1, :] * scale                             # (1, Lp)
        y1 = boxes[1:2, :] * scale
        x2 = boxes[2:3, :] * scale
        y2 = boxes[3:4, :] * scale

        # torchvision roi_align, aligned=False: clamp roi size to >= 1
        roi_w = jnp.maximum(x2 - x1, 1.0)
        roi_h = jnp.maximum(y2 - y1, 1.0)

        # output_size=(1,1), sampling_ratio=1 -> single sample at roi center
        x = x1 + 0.5 * roi_w
        y = y1 + 0.5 * roi_h

        Hf, Wf = float(H), float(W)
        valid = (y >= -1.0) & (y <= Hf) & (x >= -1.0) & (x <= Wf)
        v = valid.astype(jnp.float32)                          # (1, Lp)

        # bilinear_interpolate clamping (matches torchvision CPU/CUDA kernel)
        y = jnp.clip(y, 0.0, Hf - 1.0)
        x = jnp.clip(x, 0.0, Wf - 1.0)
        y_low = jnp.floor(y)
        x_low = jnp.floor(x)
        y_high = jnp.minimum(y_low + 1.0, Hf - 1.0)
        x_high = jnp.minimum(x_low + 1.0, Wf - 1.0)
        ly = y - y_low
        lx = x - x_low
        hy = 1.0 - ly
        hx = 1.0 - lx

        yl = y_low.astype(jnp.int32)
        yh = y_high.astype(jnp.int32)
        xl = x_low.astype(jnp.int32)
        xh = x_high.astype(jnp.int32)

        # flat one-hot indices (yl/yh/xl/xh are clamped in-range)
        f_ll = yl * W + xl                                     # (1, Lp) int32
        f_lh = yl * W + xh
        f_hl = yh * W + xl
        f_hh = yh * W + xh

        w_ll = hy * hx * v                                     # (1, Lp) f32
        w_lh = hy * lx * v
        w_hl = ly * hx * v
        w_hh = ly * lx * v

        hw_ids = lax.broadcasted_iota(jnp.int32, (HW, w_scratch.shape[1]), 0)
        zero = jnp.float32(0.0)
        # one select per corner; coincident corners carry zero extra weight
        weights = (jnp.where(hw_ids == f_ll, w_ll, zero)
                   + jnp.where(hw_ids == f_lh, w_lh, zero)
                   + jnp.where(hw_ids == f_hl, w_hl, zero)
                   + jnp.where(hw_ids == f_hh, w_hh, zero))    # (HW, Lp) f32
        # store once in the matmul input dtype -> no per-step cast
        w_scratch[...] = weights.astype(w_scratch.dtype)

    # (TC, HW) @ (HW, Lp) -> (TC, Lp), f32 accumulation on the MXU
    acc = jnp.dot(feats_ref[0], w_scratch[...],
                  preferred_element_type=jnp.float32)
    if transpose_out:
        # XLU transpose is nearly free (XLU slot idle); output is (Lp, TC),
        # lane-dense since TC is a multiple of 128.
        out_ref[0] = acc.T.astype(out_ref.dtype)
    else:
        out_ref[0] = acc.astype(out_ref.dtype)


# ----------------------------------------------------------------------------
# Wrapper helpers
# ----------------------------------------------------------------------------
def _vmem_budget_bytes():
    """Generation-aware usable-VMEM budget for this kernel."""
    try:
        cap = int(pltpu.get_tpu_info().vmem_capacity_bytes)
    except Exception:
        cap = 64 << 20            # conservative floor (v7x has 64 MiB per TC)
    # leave headroom for Mosaic internals; cap at ~100 MiB on 128 MiB parts
    return int(min(cap - (8 << 20), 100 << 20))


def _pick_channel_tile(C8, HW, L_pad, feat_itemsize, budget):
    """Largest channel tile (multiple of 8, <= min(C8, 256)) fitting VMEM."""
    tc_cap = min(C8, 256)
    # costs independent of TC: weight scratch + build temporaries + boxes
    fixed = (HW * L_pad * feat_itemsize      # weight scratch (feats dtype)
             + 3 * HW * L_pad * 4            # iota / masks / f32 build temps
             + 2 * 4 * L_pad * 4             # boxes block (double-buffered)
             + (2 << 20))                    # headroom
    tc = tc_cap
    while tc > 8:
        need = fixed + 2 * tc * HW * feat_itemsize + 2 * tc * L_pad * feat_itemsize
        if need <= budget:
            break
        tc -= 8
    return tc, fixed


# ----------------------------------------------------------------------------
# Public entry point (== RoiFeatExtraxtor.forward)
# ----------------------------------------------------------------------------
def roi_feat_extractor(feats, line_bboxes, scale):
    """feats: (B, C, H, W) NCHW; line_bboxes: (B, L, 4) = (x1, y1, x2, y2).

    Returns (B, L, C), matching RoiFeatExtraxtor.forward.
    """
    B, C, H, W = feats.shape
    L = line_bboxes.shape[1]
    HW = H * W

    # lane-dense output / weight tile: pad L (lanes) up to a multiple of 128
    L_pad = max(128, -(-L // 128) * 128)
    C8 = -(-C // 8) * 8
    feat_itemsize = jnp.dtype(feats.dtype).itemsize

    budget = _vmem_budget_bytes()
    TC, fixed_vmem = _pick_channel_tile(C8, HW, L_pad, feat_itemsize, budget)
    C_pad = -(-C8 // TC) * TC
    n_ct = C_pad // TC
    transpose_out = (TC % 128 == 0)

    # free reshape NCHW -> (B, C, H*W); no full-feature-map HBM transpose
    feats_flat = feats.reshape(B, C, HW)
    if C_pad != C:
        feats_flat = jnp.pad(feats_flat, ((0, 0), (0, C_pad - C), (0, 0)))

    # boxes -> (B, 4, L_pad): per-box scalar math runs on L lanes in-kernel
    boxes_t = jnp.transpose(line_bboxes.astype(jnp.float32), (0, 2, 1))
    if L_pad != L:
        boxes_t = jnp.pad(boxes_t, ((0, 0), (0, 0), (0, L_pad - L)))

    kernel = functools.partial(_roi_align_1x1_kernel, scale=float(scale),
                               H=H, W=W, HW=HW, transpose_out=transpose_out)

    # optional 3-deep feats pipelining (hide the ct==0 weight-build bubble)
    n_feat_buf = 2
    feats_spec_kwargs = {}
    if (n_ct >= 3 and hasattr(pl, "Buffered")
            and fixed_vmem + 3 * TC * HW * feat_itemsize
                + 2 * TC * L_pad * feat_itemsize <= budget):
        n_feat_buf = 3
        feats_spec_kwargs["pipeline_mode"] = pl.Buffered(3)

    vmem_est = (fixed_vmem
                + n_feat_buf * TC * HW * feat_itemsize
                + 2 * TC * L_pad * feat_itemsize)
    vmem_limit = int(min(max(vmem_est, 32 << 20), budget))

    if transpose_out:
        out_shape = jax.ShapeDtypeStruct((B, L_pad, C_pad), feats.dtype)
        out_spec = pl.BlockSpec((1, L_pad, TC), lambda b, c: (b, 0, c))
    else:
        out_shape = jax.ShapeDtypeStruct((B, C_pad, L_pad), feats.dtype)
        out_spec = pl.BlockSpec((1, TC, L_pad), lambda b, c: (b, c, 0))

    cost = pl.CostEstimate(
        flops=2 * B * C_pad * HW * L_pad,
        transcendentals=0,
        bytes_accessed=(B * C_pad * HW * feat_itemsize
                        + B * C_pad * L_pad * feat_itemsize
                        + B * 4 * L_pad * 4))

    out = pl.pallas_call(
        kernel,
        out_shape=out_shape,
        grid=(B, n_ct),
        in_specs=[
            pl.BlockSpec((1, 4, L_pad), lambda b, c: (b, 0, 0)),
            pl.BlockSpec((1, TC, HW), lambda b, c: (b, c, 0),
                         **feats_spec_kwargs),
        ],
        out_specs=out_spec,
        scratch_shapes=[pltpu.VMEM((HW, L_pad), feats_flat.dtype)],
        compiler_params=pltpu.CompilerParams(
            dimension_semantics=("parallel", "arbitrary"),
            vmem_limit_bytes=vmem_limit),
        cost_estimate=cost,
    )(boxes_t, feats_flat)

    if transpose_out:
        return out[:, :L, :C]                           # already (B, L, C)
    # tiny (B, C, L) slice + transpose back to the module's (B, L, C)
    return jnp.transpose(out[:, :C, :L], (0, 2, 1))


# ----------------------------------------------------------------------------
# Pure-JAX reference (roi_align 1x1, sampling_ratio=1, aligned=False)
# ----------------------------------------------------------------------------
def _reference(feats, line_bboxes, scale):
    B, C, H, W = feats.shape
    feats = feats.astype(jnp.float32)
    boxes = line_bboxes.astype(jnp.float32) * scale
    x1, y1, x2, y2 = boxes[..., 0], boxes[..., 1], boxes[..., 2], boxes[..., 3]
    roi_w = jnp.maximum(x2 - x1, 1.0)
    roi_h = jnp.maximum(y2 - y1, 1.0)
    x = x1 + 0.5 * roi_w
    y = y1 + 0.5 * roi_h
    valid = (y >= -1.0) & (y <= H) & (x >= -1.0) & (x <= W)
    y = jnp.clip(y, 0.0, H - 1.0)
    x = jnp.clip(x, 0.0, W - 1.0)
    yl = jnp.floor(y)
    xl = jnp.floor(x)
    yh = jnp.minimum(yl + 1.0, H - 1.0)
    xh = jnp.minimum(xl + 1.0, W - 1.0)
    ly, lx = y - yl, x - xl
    hy, hx = 1.0 - ly, 1.0 - lx
    yl_i, yh_i, xl_i, xh_i = (a.astype(jnp.int32) for a in (yl, yh, xl, xh))

    def gather(b, yy, xx):
        return feats[b, :, yy, xx]                      # (L, C)

    outs = []
    for b in range(B):
        v = (hy[b, :, None] * hx[b, :, None] * gather(b, yl_i[b], xl_i[b])
             + hy[b, :, None] * lx[b, :, None] * gather(b, yl_i[b], xh_i[b])
             + ly[b, :, None] * hx[b, :, None] * gather(b, yh_i[b], xl_i[b])
             + ly[b, :, None] * lx[b, :, None] * gather(b, yh_i[b], xh_i[b]))
        outs.append(v * valid[b, :, None])
    return jnp.stack(outs, axis=0)


def _make_inputs(key, B, C, H, W, L, scale, dtype):
    img_h, img_w = H / scale, W / scale
    k_feat, k_xy, k_wh = jax.random.split(key, 3)
    feats = jax.random.normal(k_feat, (B, C, H, W), dtype=jnp.float32)
    xy = jax.random.uniform(k_xy, (B, L, 2), minval=0.0,
                            maxval=jnp.array([img_w * 0.7, img_h * 0.7]))
    wh = jax.random.uniform(k_wh, (B, L, 2), minval=2.0,
                            maxval=jnp.array([img_w * 0.3, img_h * 0.3]))
    line_bboxes = jnp.concatenate([xy, xy + wh], axis=-1)   # (B, L, 4)
    return feats.astype(dtype), line_bboxes


if __name__ == "__main__":
    key = jax.random.PRNGKey(0)
    k1, k2, k3 = jax.random.split(key, 3)

    # Case 1: small-C path (TC < 128 -> (C, L) output layout + tiny transpose)
    feats, boxes = _make_inputs(k1, B=2, C=32, H=16, W=16, L=8,
                                scale=0.25, dtype=jnp.float32)
    out = jax.block_until_ready(roi_feat_extractor(feats, boxes, 0.25))
    assert out.shape == (2, 8, 32), out.shape
    ref = _reference(feats, boxes, 0.25)
    assert jnp.allclose(out, ref, atol=1e-5, rtol=1e-5), float(
        jnp.max(jnp.abs(out - ref)))

    # Case 2: 128-channel path (TC % 128 == 0 -> in-kernel transpose output)
    feats2, boxes2 = _make_inputs(k2, B=1, C=128, H=8, W=8, L=20,
                                  scale=0.5, dtype=jnp.float32)
    out2 = jax.block_until_ready(roi_feat_extractor(feats2, boxes2, 0.5))
    assert out2.shape == (1, 20, 128), out2.shape
    ref2 = _reference(feats2, boxes2, 0.5)
    assert jnp.allclose(out2, ref2, atol=1e-5, rtol=1e-5), float(
        jnp.max(jnp.abs(out2 - ref2)))

    # Case 3: bf16 feats fast path (bf16 weight scratch, f32 MXU accumulation)
    feats3, boxes3 = _make_inputs(k3, B=2, C=32, H=16, W=16, L=8,
                                  scale=0.25, dtype=jnp.bfloat16)
    out3 = jax.block_until_ready(roi_feat_extractor(feats3, boxes3, 0.25))
    assert out3.shape == (2, 8, 32), out3.shape
    ref3 = _reference(feats3, boxes3, 0.25)
    assert jnp.allclose(out3.astype(jnp.float32), ref3,
                        atol=5e-2, rtol=5e-2), float(
        jnp.max(jnp.abs(out3.astype(jnp.float32) - ref3)))

    print("KERNEL_OK")
</pallas_src>

<mosaic_0001>
module attributes {stable_mosaic.version = 11 : i64} {
  func.func @_roi_align_1x1_kernel(%arg0: i32, %arg1: i32, %arg2: memref<1x4x128xf32, #tpu.memory_space<vmem>>, %arg3: memref<1x32x256xf32, #tpu.memory_space<vmem>>, %arg4: memref<1x32x128xf32, #tpu.memory_space<vmem>>, %arg5: memref<256x128xf32, #tpu.memory_space<vmem>>) attributes {dimension_semantics = [#tpu.dimension_semantics<parallel>, #tpu.dimension_semantics<arbitrary>], iteration_bounds = array<i64: 2, 1>, scalar_prefetch = 0 : i64, scratch_operands = 1 : i64, tpu.core_type = #tpu.core_type<tc>, window_params = [{transform_indices = @transform_0, window_bounds = array<i64: 1, 4, 128>}, {transform_indices = @transform_1, window_bounds = array<i64: 1, 32, 256>}, {transform_indices = @transform_2, window_bounds = array<i64: 1, 32, 128>}]} {
    %c0_i32 = arith.constant 0 : i32
    %0 = arith.cmpi eq, %arg1, %c0_i32 : i32
    %1 = arith.extui %0 : i1 to i32
    %c0_i32_0 = arith.constant 0 : i32
    %2 = arith.cmpi ne, %1, %c0_i32_0 : i32
    scf.if %2 {
      %c0_8 = arith.constant 0 : index
      %c0_9 = arith.constant 0 : index
      %c0_10 = arith.constant 0 : index
      %10 = vector.load %arg2[%c0_8, %c0_9, %c0_10] : memref<1x4x128xf32, #tpu.memory_space<vmem>>, vector<1x4x128xf32>
      %11 = vector.shape_cast %10 : vector<1x4x128xf32> to vector<4x128xf32>
      %12 = vector.extract_strided_slice %11 {offsets = [0, 0], sizes = [1, 128], strides = [1, 1]} : vector<4x128xf32> to vector<1x128xf32>
      %cst_11 = arith.constant 2.500000e-01 : f32
      %13 = vector.broadcast %cst_11 : f32 to vector<1x128xf32>
      %14 = arith.mulf %12, %13 : vector<1x128xf32>
      %15 = vector.extract_strided_slice %11 {offsets = [1, 0], sizes = [1, 128], strides = [1, 1]} : vector<4x128xf32> to vector<1x128xf32>
      %cst_12 = arith.constant 2.500000e-01 : f32
      %16 = vector.broadcast %cst_12 : f32 to vector<1x128xf32>
      %17 = arith.mulf %15, %16 : vector<1x128xf32>
      %18 = vector.extract_strided_slice %11 {offsets = [2, 0], sizes = [1, 128], strides = [1, 1]} : vector<4x128xf32> to vector<1x128xf32>
      %cst_13 = arith.constant 2.500000e-01 : f32
      %19 = vector.broadcast %cst_13 : f32 to vector<1x128xf32>
      %20 = arith.mulf %18, %19 : vector<1x128xf32>
      %21 = vector.extract_strided_slice %11 {offsets = [3, 0], sizes = [1, 128], strides = [1, 1]} : vector<4x128xf32> to vector<1x128xf32>
      %cst_14 = arith.constant 2.500000e-01 : f32
      %22 = vector.broadcast %cst_14 : f32 to vector<1x128xf32>
      %23 = arith.mulf %21, %22 : vector<1x128xf32>
      %24 = arith.subf %20, %14 : vector<1x128xf32>
      %cst_15 = arith.constant 1.000000e+00 : f32
      %25 = vector.broadcast %cst_15 : f32 to vector<1x128xf32>
      %26 = arith.maximumf %24, %25 : vector<1x128xf32>
      %27 = arith.subf %23, %17 : vector<1x128xf32>
      %cst_16 = arith.constant 1.000000e+00 : f32
      %28 = vector.broadcast %cst_16 : f32 to vector<1x128xf32>
      %29 = arith.maximumf %27, %28 : vector<1x128xf32>
      %cst_17 = arith.constant 5.000000e-01 : f32
      %30 = vector.broadcast %cst_17 : f32 to vector<1x128xf32>
      %31 = arith.mulf %30, %26 : vector<1x128xf32>
      %32 = arith.addf %14, %31 : vector<1x128xf32>
      %cst_18 = arith.constant 5.000000e-01 : f32
      %33 = vector.broadcast %cst_18 : f32 to vector<1x128xf32>
      %34 = arith.mulf %33, %29 : vector<1x128xf32>
      %35 = arith.addf %17, %34 : vector<1x128xf32>
      %cst_19 = arith.constant -1.000000e+00 : f32
      %36 = vector.broadcast %cst_19 : f32 to vector<1x128xf32>
      %37 = arith.cmpf oge, %35, %36 : vector<1x128xf32>
      %cst_20 = arith.constant 1.600000e+01 : f32
      %38 = vector.broadcast %cst_20 : f32 to vector<1x128xf32>
      %39 = arith.cmpf ole, %35, %38 : vector<1x128xf32>
      %40 = arith.andi %37, %39 : vector<1x128xi1>
      %cst_21 = arith.constant -1.000000e+00 : f32
      %41 = vector.broadcast %cst_21 : f32 to vector<1x128xf32>
      %42 = arith.cmpf oge, %32, %41 : vector<1x128xf32>
      %43 = arith.andi %40, %42 : vector<1x128xi1>
      %cst_22 = arith.constant 1.600000e+01 : f32
      %44 = vector.broadcast %cst_22 : f32 to vector<1x128xf32>
      %45 = arith.cmpf ole, %32, %44 : vector<1x128xf32>
      %46 = arith.andi %43, %45 : vector<1x128xi1>
      %47 = arith.extui %46 : vector<1x128xi1> to vector<1x128xi32>
      %48 = arith.sitofp %47 : vector<1x128xi32> to vector<1x128xf32>
      %cst_23 = arith.constant 0.000000e+00 : f32
      %cst_24 = arith.constant 1.500000e+01 : f32
      %49 = vector.broadcast %cst_23 : f32 to vector<1x128xf32>
      %50 = arith.maximumf %49, %35 : vector<1x128xf32>
      %51 = vector.broadcast %cst_24 : f32 to vector<1x128xf32>
      %52 = arith.minimumf %51, %50 : vector<1x128xf32>
      %cst_25 = arith.constant 0.000000e+00 : f32
      %cst_26 = arith.constant 1.500000e+01 : f32
      %53 = vector.broadcast %cst_25 : f32 to vector<1x128xf32>
      %54 = arith.maximumf %53, %32 : vector<1x128xf32>
      %55 = vector.broadcast %cst_26 : f32 to vector<1x128xf32>
      %56 = arith.minimumf %55, %54 : vector<1x128xf32>
      %57 = math.floor %52 : vector<1x128xf32>
      %58 = math.floor %56 : vector<1x128xf32>
      %cst_27 = arith.constant 1.000000e+00 : f32
      %59 = vector.broadcast %cst_27 : f32 to vector<1x128xf32>
      %60 = arith.addf %57, %59 : vector<1x128xf32>
      %cst_28 = arith.constant 1.500000e+01 : f32
      %61 = vector.broadcast %cst_28 : f32 to vector<1x128xf32>
      %62 = arith.minimumf %60, %61 : vector<1x128xf32>
      %cst_29 = arith.constant 1.000000e+00 : f32
      %63 = vector.broadcast %cst_29 : f32 to vector<1x128xf32>
      %64 = arith.addf %58, %63 : vector<1x128xf32>
      %cst_30 = arith.constant 1.500000e+01 : f32
      %65 = vector.broadcast %cst_30 : f32 to vector<1x128xf32>
      %66 = arith.minimumf %64, %65 : vector<1x128xf32>
      %67 = arith.subf %52, %57 : vector<1x128xf32>
      %68 = arith.subf %56, %58 : vector<1x128xf32>
      %cst_31 = arith.constant 1.000000e+00 : f32
      %69 = vector.broadcast %cst_31 : f32 to vector<1x128xf32>
      %70 = arith.subf %69, %67 : vector<1x128xf32>
      %cst_32 = arith.constant 1.000000e+00 : f32
      %71 = vector.broadcast %cst_32 : f32 to vector<1x128xf32>
      %72 = arith.subf %71, %68 : vector<1x128xf32>
      %73 = arith.fptosi %57 : vector<1x128xf32> to vector<1x128xi32>
      %74 = arith.fptosi %62 : vector<1x128xf32> to vector<1x128xi32>
      %75 = arith.fptosi %58 : vector<1x128xf32> to vector<1x128xi32>
      %76 = arith.fptosi %66 : vector<1x128xf32> to vector<1x128xi32>
      %c16_i32 = arith.constant 16 : i32
      %77 = vector.broadcast %c16_i32 : i32 to vector<1x128xi32>
      %78 = arith.muli %73, %77 : vector<1x128xi32>
      %79 = arith.addi %78, %75 : vector<1x128xi32>
      %c16_i32_33 = arith.constant 16 : i32
      %80 = vector.broadcast %c16_i32_33 : i32 to vector<1x128xi32>
      %81 = arith.muli %73, %80 : vector<1x128xi32>
      %82 = arith.addi %81, %76 : vector<1x128xi32>
      %c16_i32_34 = arith.constant 16 : i32
      %83 = vector.broadcast %c16_i32_34 : i32 to vector<1x128xi32>
      %84 = arith.muli %74, %83 : vector<1x128xi32>
      %85 = arith.addi %84, %75 : vector<1x128xi32>
      %c16_i32_35 = arith.constant 16 : i32
      %86 = vector.broadcast %c16_i32_35 : i32 to vector<1x128xi32>
      %87 = arith.muli %74, %86 : vector<1x128xi32>
      %88 = arith.addi %87, %76 : vector<1x128xi32>
      %89 = arith.mulf %70, %72 : vector<1x128xf32>
      %90 = arith.mulf %89, %48 : vector<1x128xf32>
      %91 = arith.mulf %70, %68 : vector<1x128xf32>
      %92 = arith.mulf %91, %48 : vector<1x128xf32>
      %93 = arith.mulf %67, %72 : vector<1x128xf32>
      %94 = arith.mulf %93, %48 : vector<1x128xf32>
      %95 = arith.mulf %67, %68 : vector<1x128xf32>
      %96 = arith.mulf %95, %48 : vector<1x128xf32>
      %97 = tpu.iota {dimensions = array<i32: 0>} : vector<256x128xi32>
      %98 = vector.broadcast %79 : vector<1x128xi32> to vector<256x128xi32>
      %99 = arith.cmpi eq, %97, %98 : vector<256x128xi32>
      %cst_36 = arith.constant 0.000000e+00 : f32
      %100 = vector.shape_cast %90 : vector<1x128xf32> to vector<1x128xf32>
      %101 = vector.broadcast %100 : vector<1x128xf32> to vector<256x128xf32>
      %102 = vector.broadcast %cst_36 : f32 to vector<256x128xf32>
      %103 = arith.select %99, %101, %102 : vector<256x128xi1>, vector<256x128xf32>
      %104 = vector.broadcast %82 : vector<1x128xi32> to vector<256x128xi32>
      %105 = arith.cmpi eq, %97, %104 : vector<256x128xi32>
      %cst_37 = arith.constant 0.000000e+00 : f32
      %106 = vector.shape_cast %92 : vector<1x128xf32> to vector<1x128xf32>
      %107 = vector.broadcast %106 : vector<1x128xf32> to vector<256x128xf32>
      %108 = vector.broadcast %cst_37 : f32 to vector<256x128xf32>
      %109 = arith.select %105, %107, %108 : vector<256x128xi1>, vector<256x128xf32>
      %110 = arith.addf %103, %109 : vector<256x128xf32>
      %111 = vector.broadcast %85 : vector<1x128xi32> to vector<256x128xi32>
      %112 = arith.cmpi eq, %97, %111 : vector<256x128xi32>
      %cst_38 = arith.constant 0.000000e+00 : f32
      %113 = vector.shape_cast %94 : vector<1x128xf32> to vector<1x128xf32>
      %114 = vector.broadcast %113 : vector<1x128xf32> to vector<256x128xf32>
      %115 = vector.broadcast %cst_38 : f32 to vector<256x128xf32>
      %116 = arith.select %112, %114, %115 : vector<256x128xi1>, vector<256x128xf32>
      %117 = arith.addf %110, %116 : vector<256x128xf32>
      %118 = vector.broadcast %88 : vector<1x128xi32> to vector<256x128xi32>
      %119 = arith.cmpi eq, %97, %118 : vector<256x128xi32>
      %cst_39 = arith.constant 0.000000e+00 : f32
      %120 = vector.shape_cast %96 : vector<1x128xf32> to vector<1x128xf32>
      %121 = vector.broadcast %120 : vector<1x128xf32> to vector<256x128xf32>
      %122 = vector.broadcast %cst_39 : f32 to vector<256x128xf32>
      %123 = arith.select %119, %121, %122 : vector<256x128xi1>, vector<256x128xf32>
      %124 = arith.addf %117, %123 : vector<256x128xf32>
      %c0_40 = arith.constant 0 : index
      %c0_41 = arith.constant 0 : index
      %125 = vector.load %arg5[%c0_40, %c0_41] : memref<256x128xf32, #tpu.memory_space<vmem>>, vector<256x128xf32>
      tpu.vector_store %arg5[%c0_40, %c0_41], %124 {strides = array<i32>} : memref<256x128xf32, #tpu.memory_space<vmem>>, vector<256x128xf32>,
    } else {
    }
    %c0 = arith.constant 0 : index
    %c0_1 = arith.constant 0 : index
    %c0_2 = arith.constant 0 : index
    %3 = vector.load %arg3[%c0, %c0_1, %c0_2] : memref<1x32x256xf32, #tpu.memory_space<vmem>>, vector<1x32x256xf32>
    %4 = vector.shape_cast %3 : vector<1x32x256xf32> to vector<32x256xf32>
    %c0_3 = arith.constant 0 : index
    %c0_4 = arith.constant 0 : index
    %5 = vector.load %arg5[%c0_3, %c0_4] : memref<256x128xf32, #tpu.memory_space<vmem>>, vector<256x128xf32>
    %cst = arith.constant dense<0.000000e+00> : vector<32x128xf32>
    %6 = tpu.matmul %4, %5, %cst {dimension_numbers = #tpu.dot_dimension_numbers<[1], [0], [0], [1], [0, 0, 1, 1], [], []>} : vector<32x256xf32>, vector<256x128xf32>, vector<32x128xf32> -> vector<32x128xf32>
    %c0_5 = arith.constant 0 : index
    %c0_6 = arith.constant 0 : index
    %c0_7 = arith.constant 0 : index
    %7 = vector.load %arg4[%c0_5, %c0_6, %c0_7] : memref<1x32x128xf32, #tpu.memory_space<vmem>>, vector<1x32x128xf32>
    %8 = vector.shape_cast %7 : vector<1x32x128xf32> to vector<32x128xf32>
    %9 = vector.shape_cast %6 : vector<32x128xf32> to vector<1x32x128xf32>
    tpu.vector_store %arg4[%c0_5, %c0_6, %c0_7], %9 {strides = array<i32>} : memref<1x32x128xf32, #tpu.memory_space<vmem>>, vector<1x32x128xf32>,
    return
  }
  func.func @transform_0(%arg0: i32, %arg1: i32) -> (i32, i32, i32) {
    %c0_i32 = arith.constant 0 : i32
    %c0_i32_0 = arith.constant 0 : i32
    %c0_i32_1 = arith.constant 0 : i32
    return %arg0, %c0_i32, %c0_i32_0 : i32, i32, i32
  }
  func.func @transform_1(%arg0: i32, %arg1: i32) -> (i32, i32, i32) {
    %c0_i32 = arith.constant 0 : i32
    %c0_i32_0 = arith.constant 0 : i32
    return %arg0, %arg1, %c0_i32 : i32, i32, i32
  }
  func.func @transform_2(%arg0: i32, %arg1: i32) -> (i32, i32, i32) {
    %c0_i32 = arith.constant 0 : i32
    %c0_i32_0 = arith.constant 0 : i32
    return %arg0, %arg1, %c0_i32 : i32, i32, i32
  }
}

</mosaic_0001>

<bundles_post_ra>
// kernel: tpu_custom_call.1
= control target key start
LH: loop header
LB: loop body
LE: loop exit
PB: predicated region body
PF: predicated region fallthrough
CT: control target
= control target key end

     0   :  { %7 = vsyncpa [#allocation4], 0  ;;  %s2031_s0 = inlined_call_operand.hbm [shape: f32[2,4,128], index: 0, kind: input, shape index: {}]   ;;  %s2032_s1 = inlined_call_operand.hbm [shape: f32[2,32,256], index: 1, kind: input, shape index: {}]   ;;  %s2033_s2 = inlined_call_operand.hbm [shape: f32[2,32,128], index: 2, kind: output, shape index: {}]  }
   0x1   :  { %9 = vsyncpa [#allocation4 + $0x1], 0 }
   0x2   :  { %10 = vsyncpa [#allocation7], 0 }
   0x3   :  { %12 = vsyncpa [#allocation7 + $0x1], 0 }
   0x4   :  { %13 = vsyncpa [#allocation5], 0 }
   0x5   :  { %15 = vsyncpa [#allocation5 + $0x1], 0  ;;  %s1324_s9 = smov 0   ;;  %s1326_s10 = smov 0  }
   0x6   :  { %s1328_s11 = smov 0   ;;  %s1330_s12 = smov 0  }
   0x7   :  { %s1332_s13 = smov 0   ;;  %s1334_s14 = smov 0  }
   0x8 LB: > { %s984_s15 = sadd.s32 4294967295, %s1298_s14   ;;  %s985_s16 = sadd.s32 4294967294, %s1298_s14   ;;  %s1298_s14 = sphi %s1334_s14, %s21_s14   ;;  %s1294_s13 = sphi %s1332_s13, %s2047_s13   ;;  %s1290_s12 = sphi %s1330_s12, %s2046_s12   ;;  %s1286_s11 = sphi %s1328_s11, %s2045_s11   ;;  %s1282_s10 = sphi %s1326_s10, %s2044_s10   ;;  %s1278_s9 = sphi %s1324_s9, %s2043_s9  }
   0x9   : > { %s33_s17 = sadd.s32 1, %s1294_s13  ;;  %s40_s18 = sadd.s32 1, %s1286_s11 }
   0xa   : > { %p35_p0 = scmp.ge.s32.totalorder %s33_s17, 2  ;;  %p47_p1 = scmp.ne.s32.totalorder %s1286_s11, %s1282_s10 }
   0xb   : > { %p48_p2 = scmp.eq.s32.totalorder %s1298_s14, 0  ;;  %p53_p3 = scmp.ne.s32.totalorder %s1282_s10, %s1278_s9 }
   0xc   : > { %s2049_s17 = smov (%p35_p0, %s33_s17), 0  ;;  %p54_p5 = scmp.eq.s32.totalorder %s984_s15, 0 }
   0xd   : > { %p1365_p4 = por %p48_p2, %p47_p1  ;;  %s37_s20 = ssub.s32 %s1294_s13, %s2049_s17 }
   0xe   : > { %p107_p6 = scmp.eq.s32.totalorder %s984_s15, 1  ;;  %p38_p7 = scmp.eq.s32.totalorder %s37_s20, 0 }
   0xf   : > { %p1371_p8 = por %p54_p5, %p53_p3  ;;  %p113_p10 = scmp.eq.s32.totalorder %s985_s16, 1 }
  0x10   : > { %p1375_p9 = por %p107_p6, %p47_p1  ;;  %p1102_p13 = scmp.lt.s32.totalorder %s1298_s14, 2 }
  0x11   : > { %s1380_s23 = scalar_select %p38_p7, %s1286_s11, %s40_s18  }
  0x12   : > { %p1382_p11 = por %p113_p10, %p53_p3  ;;  %s1389_s25 = sand.u32 1, %s1286_s11  }
  0x13   : > { %s988_s26 = sshll.u32 %s1389_s25, 2  ;;  %s989_s27 = sshll.u32 %s1294_s13, 6 }
  0x14   : > { %s142_s30 = scalar_lea.hbm %s2031_s0, %s989_s27  ;;  %s137_s3 = scalar_lea.vmem [#allocation3], %s988_s26 }
  0x15   : > { %s144_s4 = sshll.u32 %s137_s3, 4  ;;  %p1398_p0 = pnand %p1102_p13, %p1365_p4  ;;  %s145_s4 = int_to_ptr.vmem [resolvable:$true] %s144_s4 }
  0x16   : > { %p993_p1 = scmp.ge.s32.totalorder %s1298_s14, 1  ;;  %p173_p2 = scmp.lt.s32.totalorder %s1298_s14, 3 }
  0x17   : > { %s134_s6 = scalar_lea.sflag [#allocation4], %s1389_s25  ;;  %p1160_p3 = pneg %p1398_p0 }
  0x18   : > { %s1171_s7 = scalar_lea.vmem %s145_s4, 64  ;;  %s1300_s8 = smov [#allocation3]  }
  0x19   : > { %p1172_p5 = scmp.ne.s32.totalorder %s145_s4, %s1171_s7  ;;  %s1176_s15 = sshll.u32 %s1300_s8, 4  ;;  %s1177_s15 = int_to_ptr.vmem [resolvable:$false] %s1176_s15 }
  0x1a   : > { %s1178_s16 = scalar_lea.vmem %s1177_s15, 128  ;;  %p1179_p4 = scmp.lt.s32.totalorder %s145_s4, %s1177_s15 }
  0x1b   : > { %p1174_p6 = pnand %p1172_p5, %p1160_p3  ;;  %p1180_p10 = scmp.lt.s32.totalorder %s1178_s16, %s1171_s7 }
  0x1d   : > { %p1175_p7 = pneg %p1174_p6  ;;  %p1181_p13 = por %p1180_p10, %p1179_p4 }
  0x1f   : > { %p1182_p12 = pnand %p1181_p13, %p1175_p7 }
  0x21   : > { %1185 = shalt.err (!%p1182_p12)
}
  0x22   : > { %1094 = dma.hbm_to_vmem [thread:$0]  (!%p1398_p0), %s142_s30, 64, %s145_s4, %s134_s6  }
  0x23   : > { %p1416_p5 = pnand %p993_p1, %p173_p2  ;;  %s990_s19 = sshll.u32 %s1389_s25, 6 }
  0x24   : > { %s1003_s20 = sshll.u32 %s1294_s13, 10  ;;  %s155_s29 = scalar_lea.vmem [#allocation6], %s990_s19 }
  0x25   : > { %s164_s28 = scalar_lea.hbm %s2032_s1, %s1003_s20  ;;  %s165_s3 = sshll.u32 %s155_s29, 4  ;;  %s166_s3 = int_to_ptr.vmem [resolvable:$true] %s165_s3 }
  0x26   : > { %s152_s7 = scalar_lea.sflag [#allocation7], %s1389_s25  ;;  %s1199_s8 = scalar_lea.vmem %s166_s3, 1024 }
  0x27   : > { %p1200_p12 = scmp.ne.s32.totalorder %s166_s3, %s1199_s8  ;;  %s1301_s30 = smov [#allocation6]  }
  0x28   : > { %s1204_s4 = sshll.u32 %s1301_s30, 4  ;;  %s1205_s4 = int_to_ptr.vmem [resolvable:$false] %s1204_s4 }
  0x29   : > { %p1202_p6 = pnand %p1200_p12, %p1160_p3  ;;  %s1206_s6 = scalar_lea.vmem %s1205_s4, 2048 }
  0x2a   : > { %p1207_p1 = scmp.lt.s32.totalorder %s166_s3, %s1205_s4  ;;  %p1208_p2 = scmp.lt.s32.totalorder %s1206_s6, %s1199_s8 }
  0x2b   : > { %p1203_p7 = pneg %p1202_p6 }
  0x2c   : > { %p1209_p4 = por %p1208_p2, %p1207_p1 }
  0x2e   : > { %p1210_p10 = pnand %p1209_p4, %p1203_p7 }
  0x30   : > { %1213 = shalt.err (!%p1210_p10)
}
  0x31   : > { %s1302_s15 = smov 256   ;;  %s1303_s16 = smov 16  }
  0x32   : > { %1097 = dma.hbm_to_vmem [thread:$0]  (!%p1398_p0), %s164_s28, 1024, %s166_s3, %s152_s7, %s1302_s15, %s1302_s15, %s1303_s16  }
  0x33   : > { %177 = sbr.rel (%p1416_p5) target bundleno = 401 (0x191), region = 28  ;;  %s1434_s25 = sand.u32 (!%p1416_p5), 1, %s1282_s10  }
  0x34   : > { %s994_s19 = sshll.u32 (!%p1416_p5), %s1434_s25, 2  ;;  %s180_s20 = scalar_lea.sflag (!%p1416_p5), [#allocation4], %s1434_s25 }
  0x35   : > { %s183_s26 = scalar_lea.vmem (!%p1416_p5), [#allocation3], %s994_s19 }
  0x38   : > { %1265 = dma.done.wait (%p1371_p8), %s180_s20, 64  }
  0x39   : > { %1267 = vsyncadd (%p1371_p8), %s180_s20, 4294967232  ;;  %s995_s5 = sshll.u32 %s1434_s25, 6  ;;  %s189_s18 = scalar_lea.sflag [#allocation7], %s1434_s25 }
  0x3a   : > { %s1444_s27 = scalar_lea.vmem [#allocation6], %s995_s5 }
  0x3b   : > { %1269 = dma.done.wait (%p1371_p8), %s189_s18, 1024  }
  0x3c   : > { %1271 = vsyncadd (%p1371_p8), %s189_s18, 4294966272  ;;  %v224_v0 = vld [vmem:[%s183_s26] sm:$0xf]  ;;  %v730_v2 = vld [vmem:[%s1444_s27 + $0x8] sm:$0xff]  ;;  %v280_v6 = vlaneseq  ;;  %v1304_v20 = vmov 0   ;;  %v1305_v52 = vmov 0.0  }
  0x3d   : > { %v225_v1 = vmul.f32 0.25, %v224_v0  ;;  %v734_v3 = vld [vmem:[%s1444_s27 + $0x28] sm:$0xff]  ;;  %833 = vmatprep.mubr.f32.mxu0 %v730_v2  ;;  %s996_s21 = sshll.u32 %s1434_s25, 5  ;;  %s1004_s3 = sshll.u32 %s1290_s12, 9 }
  0x3e   : > { %843 = vmatprep.mubr.f32.mxu1 %v734_v3  ;;  %v1452_v9 = vshrl.u32 %v280_v6, 7  ;;  %s217_s28 = scalar_lea.vmem [#allocation8], %s996_s21  ;;  %s1983_s30 = scalar_lea.hbm %s2033_s2, %s1004_s3 }
  0x3f   : > { %v227_v4 = vrot.slane %v225_v1, 6  ;;  %s874_s29 = sshll.u32 %s217_s28, 4  ;;  %s859_s12 = scalar_lea.sflag [#allocation5], %s1434_s25  ;;  %s1978_s29 = int_to_ptr.vmem [resolvable:$true] %s874_s29 }
  0x40   : > { %v1455_v12 = vsub.s32 1, %v1452_v9  ;;  %v1458_v13 = vadd.s32 248, %v1452_v9  ;;  %v1461_v14 = vadd.s32 120, %v1452_v9  ;;  %v1464_v15 = vadd.s32 240, %v1452_v9  ;;  %s1214_s4 = scalar_lea.vmem %s1978_s29, 512  ;;  %s1306_s6 = smov [#allocation8]  }
  0x41   : > { %v229_v5 = vsub.f32 %v225_v1, %v227_v4  ;;  %v1467_v16 = vadd.s32 112, %v1452_v9  ;;  %v1470_v17 = vadd.s32 232, %v1452_v9  ;;  %v1473_v19 = vadd.s32 104, %v1452_v9  ;;  %p1215_p8 = scmp.ne.s32.totalorder %s1978_s29, %s1214_s4  ;;  %s1218_s15 = sshll.u32 %s1306_s6, 4  ;;  %s1219_s15 = int_to_ptr.vmem [resolvable:$false] %s1218_s15 }
  0x42   : > { %v1476_v23 = vadd.s32 224, %v1452_v9  ;;  %v1479_v24 = vadd.s32 96, %v1452_v9  ;;  %v1486_v29 = vadd.s32 216, %v1452_v9  ;;  %v1489_v30 = vadd.s32 88, %v1452_v9  ;;  %s1220_s16 = scalar_lea.vmem %s1219_s15, 1024  ;;  %p1221_p13 = scmp.lt.s32.totalorder %s1978_s29, %s1219_s15 }
  0x43   : > { %v230_v7 = vmax.f32 %v229_v5, 1.0  ;;  %v1492_v31 = vadd.s32 208, %v1452_v9  ;;  %v1495_v32 = vadd.s32 80, %v1452_v9  ;;  %v1498_v33 = vadd.s32 200, %v1452_v9  ;;  %p1216_p0 = pnand %p1215_p8, %p1375_p9  ;;  %p1222_p5 = scmp.lt.s32.totalorder %s1220_s16, %s1214_s4 }
  0x44   : > { %v1501_v35 = vadd.s32 72, %v1452_v9  ;;  %v1506_v36 = vadd.s32 192, %v1452_v9  ;;  %v1509_v37 = vadd.s32 64, %v1452_v9  ;;  %v1512_v38 = vadd.s32 184, %v1452_v9 }
  0x45   : > { %v231_v8 = vmul.f32 0.5, %v230_v7  ;;  %v1515_v39 = vadd.s32 56, %v1452_v9  ;;  %v1518_v43 = vadd.s32 176, %v1452_v9  ;;  %v1521_v44 = vadd.s32 48, %v1452_v9  ;;  %p1217_p3 = pneg %p1216_p0  ;;  %p1223_p12 = por %p1222_p5, %p1221_p13 }
  0x46   : > { %v1524_v45 = vadd.s32 168, %v1452_v9  ;;  %v1527_v46 = vadd.s32 40, %v1452_v9  ;;  %v1530_v47 = vadd.s32 160, %v1452_v9  ;;  %v1533_v54 = vadd.s32 32, %v1452_v9 }
  0x47   : > { %v233_v10 = vrot.slane %v231_v8, 2  ;;  %v1536_v55 = vadd.s32 152, %v1452_v9  ;;  %v1539_v56 = vadd.s32 24, %v1452_v9  ;;  %v1542_v63 = vadd.s32 144, %v1452_v9  ;;  %p1224_p6 = pnand %p1223_p12, %p1217_p3 }
  0x48   : > { %v1545_v0 = vadd.s32 16, %v1452_v9  ;;  %v1548_v7 = vadd.s32 136, %v1452_v9  ;;  %v1551_v8 = vadd.s32 8, %v1452_v9 }
  0x49   : > { %v235_v11 = vadd.f32 %v233_v10, %v225_v1 }
  0x4b   : > { %vm236_vm0 = vcmp.ge.f32.partialorder %v235_v11, -1.0  ;;  %vm237_vm1 = vcmp.le.f32.partialorder %v235_v11, 16.0  ;;  %v249_v18 = vmax.f32 %v235_v11, 0.0 }
  0x4c   : > { %v239_v21 = vsel %vm236_vm0, 1, %v1304_v20  ;;  %v243_v22 = vsel %vm237_vm1, 1, %v1304_v20  ;;  %vm1481_vm2 = vmand %vm236_vm0, %vm237_vm1 }
  0x4d   : > { %v240_v26 = vrot.slane %v239_v21, 7  ;;  %v244_v27 = vrot.slane %v243_v22, 7  ;;  %v250_v28 = vmin.f32 %v249_v18, 15.0 }
  0x4f   : > { %vm241_vm3 = vcmp.ne.s32.totalorder %v240_v26, 0  ;;  %vm245_vm4 = vcmp.ne.s32.totalorder %v244_v27, 0  ;;  %v251_v34 = vfloor.f32 %v250_v28  ;;  %v1563_v26 = vadd.s32 128, %v1452_v9 }
  0x50   : > { %vm242_vm5 = vmand %vm1481_vm2, %vm241_vm3 }
  0x51   : > { %vm246_vm6 = vmand %vm242_vm5, %vm245_vm4  ;;  %v252_v40 = vadd.f32 1.0, %v251_v34  ;;  %v254_v41 = vsub.f32 %v250_v28, %v251_v34  ;;  %v1081_v42 = vtrunc.f32 %v251_v34 }
  0x52   : > { %v997_v53 = vsel %vm246_vm6, 1.0, %v1305_v52 }
  0x53   : > { %v253_v48 = vmin.f32 %v252_v40, 15.0  ;;  %v255_v49 = vsub.f32 1.0, %v254_v41  ;;  %v1082_v50 = vcvt.f32.s32 %v1081_v42  ;;  %v272_v51 = vrot.slane %v254_v41, 7 }
  0x55   : > { %v1083_v57 = vtrunc.f32 %v253_v48  ;;  %v258_v58 = vmul.u32 16, %v1082_v50  ;;  %v259_v59 = vrot.slane %v1082_v50, 7  ;;  %v267_v60 = vrot.slane %v255_v49, 7 }
  0x56   : > { %v274_v61 = vmul.f32 %v272_v51, %v255_v49  ;;  %v278_v62 = vmul.f32 %v272_v51, %v254_v41 }
  0x57   : > { %v1084_v1 = vcvt.f32.s32 %v1083_v57  ;;  %v260_v2 = vadd.s32 %v259_v59, %v258_v58  ;;  %v269_v3 = vmul.f32 %v267_v60, %v255_v49  ;;  %v276_v4 = vmul.f32 %v267_v60, %v254_v41 }
  0x58   : > { %v275_v5 = vmul.f32 %v997_v53, %v274_v61  ;;  %v279_v6 = vmul.f32 %v997_v53, %v278_v62 }
  0x59   : > { %v261_v10 = vrot.slane %v1084_v1, 7  ;;  %v263_v11 = vmul.u32 16, %v1084_v1  ;;  %v270_v18 = vmul.f32 %v997_v53, %v269_v3  ;;  %v277_v20 = vmul.f32 %v997_v53, %v276_v4 }
  0x5a   : > { %v1554_v21 = vrot.slane %v260_v2, %v1455_v12  ;;  %v1557_v22 = vrot.slane %v275_v5, %v1455_v12  ;;  %v1560_v25 = vrot.slane %v279_v6, %v1455_v12 }
  0x5b   : > { %v262_v27 = vadd.s32 %v261_v10, %v258_v58  ;;  %v264_v28 = vadd.s32 %v263_v11, %v259_v59  ;;  %v265_v34 = vadd.s32 %v263_v11, %v261_v10  ;;  %v1566_v40 = vrot.slane %v270_v18, %v1455_v12 }
  0x5c   : > { %v1569_v41 = vrot.slane %v277_v20, %v1455_v12  ;;  %vm348_vm7 = vcmp.eq.s32.totalorder %v1458_v13, %v1554_v21  ;;  %vm332_vm8 = vcmp.eq.s32.totalorder %v1461_v14, %v1554_v21  ;;  %vm347_vm9 = vcmp.eq.s32.totalorder %v1464_v15, %v1554_v21 }
  0x5d   : > { %v1578_v42 = vrot.slane %v262_v27, %v1455_v12  ;;  %v1581_v48 = vrot.slane %v264_v28, %v1455_v12  ;;  %v1584_v49 = vrot.slane %v265_v34, %v1455_v12  ;;  %v384_v50 = vsel %vm348_vm7, %v1566_v40, 0.0 }
  0x5e   : > { %v368_v51 = vsel %vm332_vm8, %v1566_v40, 0.0  ;;  %v383_v52 = vsel %vm347_vm9, %v1566_v40, 0.0  ;;  %vm331_vm10 = vcmp.eq.s32.totalorder %v1467_v16, %v1554_v21  ;;  %vm346_vm11 = vcmp.eq.s32.totalorder %v1470_v17, %v1554_v21 }
  0x5f   : > { %vm420_vm12 = vcmp.eq.s32.totalorder %v1458_v13, %v1578_v42  ;;  %vm524_vm13 = vcmp.eq.s32.totalorder %v1458_v13, %v1581_v48  ;;  %vm628_vm14 = vcmp.eq.s32.totalorder %v1458_v13, %v1584_v49  ;;  %vm404_vm15 = vcmp.eq.s32.totalorder %v1461_v14, %v1578_v42 }
  0x60   : > { %v456_v12 = vsel %vm420_vm12, %v1557_v22, 0.0  ;;  %v560_v53 = vsel %vm524_vm13, %v1569_v41, 0.0  ;;  %v664_v57 = vsel %vm628_vm14, %v1560_v25, 0.0  ;;  %v440_v58 = vsel %vm404_vm15, %v1557_v22, 0.0 }
  0x61   : > { %v488_v59 = vadd.f32 %v456_v12, %v384_v50  ;;  %v472_v60 = vadd.f32 %v440_v58, %v368_v51  ;;  %vm508_vm0 = vcmp.eq.s32.totalorder %v1461_v14, %v1581_v48  ;;  %vm612_vm1 = vcmp.eq.s32.totalorder %v1461_v14, %v1584_v49 }
  0x62   : > { %v544_v13 = vsel %vm508_vm0, %v1569_v41, 0.0  ;;  %v648_v61 = vsel %vm612_vm1, %v1560_v25, 0.0  ;;  %vm419_vm2 = vcmp.eq.s32.totalorder %v1464_v15, %v1578_v42  ;;  %vm523_vm3 = vcmp.eq.s32.totalorder %v1464_v15, %v1581_v48 }
  0x63   : > { %v592_v62 = vadd.f32 %v560_v53, %v488_v59  ;;  %v576_v1 = vadd.f32 %v544_v13, %v472_v60  ;;  %v455_v2 = vsel %vm419_vm2, %v1557_v22, 0.0  ;;  %v559_v3 = vsel %vm523_vm3, %v1569_v41, 0.0 }
  0x64   : > { %v487_v4 = vadd.f32 %v455_v2, %v383_v52  ;;  %vm627_vm4 = vcmp.eq.s32.totalorder %v1464_v15, %v1584_v49  ;;  %v367_v14 = vsel %vm331_vm10, %v1566_v40, 0.0  ;;  %vm403_vm5 = vcmp.eq.s32.totalorder %v1467_v16, %v1578_v42 }
  0x65   : > { %v696_v5 = vadd.f32 %v664_v57, %v592_v62  ;;  %v680_v6 = vadd.f32 %v648_v61, %v576_v1  ;;  %v663_v10 = vsel %vm627_vm4, %v1560_v25, 0.0  ;;  %v439_v11 = vsel %vm403_vm5, %v1557_v22, 0.0 }
  0x66   : > { %v591_v18 = vadd.f32 %v559_v3, %v487_v4  ;;  %v471_v20 = vadd.f32 %v439_v11, %v367_v14  ;;  %vm507_vm6 = vcmp.eq.s32.totalorder %v1467_v16, %v1581_v48  ;;  %vm611_vm7 = vcmp.eq.s32.totalorder %v1467_v16, %v1584_v49 }
  0x67   : > { %1005 = vmatprep.subr.mxu0 %v696_v5  ;;  %1049 = vmatprep.subr.mxu1 %v696_v5  ;;  %v543_v15 = vsel %vm507_vm6, %v1569_v41, 0.0  ;;  %v647_v27 = vsel %vm611_vm7, %v1560_v25, 0.0  ;;  %v382_v28 = vsel %vm346_vm11, %v1566_v40, 0.0  ;;  %vm418_vm8 = vcmp.eq.s32.totalorder %v1470_v17, %v1578_v42 }
  0x68   : > { %1006 = vmatpush3.msra.mxu0 %v680_v6  ;;  %1065 = vmatpush3.msra.mxu1 %v680_v6  ;;  %v695_v34 = vadd.f32 %v663_v10, %v591_v18  ;;  %v575_v50 = vadd.f32 %v543_v15, %v471_v20  ;;  %v454_v16 = vsel %vm418_vm8, %v1557_v22, 0.0  ;;  %vm522_vm9 = vcmp.eq.s32.totalorder %v1470_v17, %v1581_v48 }
  0x69   : > { %v486_v51 = vadd.f32 %v454_v16, %v382_v28  ;;  %v558_v52 = vsel %vm522_vm9, %v1569_v41, 0.0  ;;  %vm626_vm10 = vcmp.eq.s32.totalorder %v1470_v17, %v1584_v49  ;;  %vm330_vm11 = vcmp.eq.s32.totalorder %v1473_v19, %v1554_v21 }
  0x6a   : > { %1007 = vmatprep.subr.mxu0 %v695_v34  ;;  %1050 = vmatprep.subr.mxu1 %v695_v34  ;;  %v679_v12 = vadd.f32 %v647_v27, %v575_v50  ;;  %v662_v53 = vsel %vm626_vm10, %v1560_v25, 0.0  ;;  %v366_v57 = vsel %vm330_vm11, %v1566_v40, 0.0  ;;  %vm402_vm12 = vcmp.eq.s32.totalorder %v1473_v19, %v1578_v42 }
  0x6b   : > { %v590_v58 = vadd.f32 %v558_v52, %v486_v51  ;;  %v438_v59 = vsel %vm402_vm12, %v1557_v22, 0.0  ;;  %vm506_vm13 = vcmp.eq.s32.totalorder %v1473_v19, %v1581_v48  ;;  %vm610_vm14 = vcmp.eq.s32.totalorder %v1473_v19, %v1584_v49 }
  0x6c   : > { %1008 = vmatpush3.msra.mxu0 %v679_v12  ;;  %1066 = vmatpush3.msra.mxu1 %v679_v12  ;;  %v470_v17 = vadd.f32 %v438_v59, %v366_v57  ;;  %v542_v60 = vsel %vm506_vm13, %v1569_v41, 0.0  ;;  %v646_v13 = vsel %vm610_vm14, %v1560_v25, 0.0  ;;  %vm345_vm15 = vcmp.eq.s32.totalorder %v1476_v23, %v1554_v21 }
  0x6d   : > { %v694_v61 = vadd.f32 %v662_v53, %v590_v58  ;;  %v381_v62 = vsel %vm345_vm15, %v1566_v40, 0.0  ;;  %vm417_vm0 = vcmp.eq.s32.totalorder %v1476_v23, %v1578_v42  ;;  %vm521_vm1 = vcmp.eq.s32.totalorder %v1476_v23, %v1581_v48 }
  0x6e   : > { %v574_v19 = vadd.f32 %v542_v60, %v470_v17  ;;  %v453_v1 = vsel %vm417_vm0, %v1557_v22, 0.0  ;;  %v557_v2 = vsel %vm521_vm1, %v1569_v41, 0.0  ;;  %vm625_vm2 = vcmp.eq.s32.totalorder %v1476_v23, %v1584_v49 }
  0x6f   : > { %1009 = vmatprep.subr.mxu0 %v694_v61  ;;  %1051 = vmatprep.subr.mxu1 %v694_v61  ;;  %v485_v3 = vadd.f32 %v453_v1, %v381_v62  ;;  %v661_v4 = vsel %vm625_vm2, %v1560_v25, 0.0  ;;  %vm329_vm3 = vcmp.eq.s32.totalorder %v1479_v24, %v1554_v21  ;;  %vm401_vm4 = vcmp.eq.s32.totalorder %v1479_v24, %v1578_v42 }
  0x70   : > { %v678_v14 = vadd.f32 %v646_v13, %v574_v19  ;;  %v365_v5 = vsel %vm329_vm3, %v1566_v40, 0.0  ;;  %v437_v6 = vsel %vm401_vm4, %v1557_v22, 0.0  ;;  %vm505_vm5 = vcmp.eq.s32.totalorder %v1479_v24, %v1581_v48 }
  0x71   : > { %v589_v23 = vadd.f32 %v557_v2, %v485_v3  ;;  %v469_v10 = vadd.f32 %v437_v6, %v365_v5  ;;  %v541_v11 = vsel %vm505_vm5, %v1569_v41, 0.0  ;;  %vm609_vm6 = vcmp.eq.s32.totalorder %v1479_v24, %v1584_v49 }
  0x72   : > { %1010 = vmatpush3.msra.mxu0 %v678_v14  ;;  %1067 = vmatpush3.msra.mxu1 %v678_v14  ;;  %v645_v18 = vsel %vm609_vm6, %v1560_v25, 0.0  ;;  %vm344_vm7 = vcmp.eq.s32.totalorder %v1486_v29, %v1554_v21  ;;  %vm416_vm8 = vcmp.eq.s32.totalorder %v1486_v29, %v1578_v42  ;;  %vm520_vm9 = vcmp.eq.s32.totalorder %v1486_v29, %v1581_v48 }
  0x73   : > { %v693_v20 = vadd.f32 %v661_v4, %v589_v23  ;;  %v573_v15 = vadd.f32 %v541_v11, %v469_v10  ;;  %v380_v27 = vsel %vm344_vm7, %v1566_v40, 0.0  ;;  %v452_v28 = vsel %vm416_vm8, %v1557_v22, 0.0 }
  0x74   : > { %v484_v24 = vadd.f32 %v452_v28, %v380_v27  ;;  %v556_v34 = vsel %vm520_vm9, %v1569_v41, 0.0  ;;  %vm624_vm10 = vcmp.eq.s32.totalorder %v1486_v29, %v1584_v49  ;;  %vm328_vm11 = vcmp.eq.s32.totalorder %v1489_v30, %v1554_v21 }
  0x75   : > { %1011 = vmatprep.subr.mxu0 %v693_v20  ;;  %1052 = vmatprep.subr.mxu1 %v693_v20  ;;  %v677_v50 = vadd.f32 %v645_v18, %v573_v15  ;;  %v660_v16 = vsel %vm624_vm10, %v1560_v25, 0.0  ;;  %v364_v51 = vsel %vm328_vm11, %v1566_v40, 0.0  ;;  %vm400_vm12 = vcmp.eq.s32.totalorder %v1489_v30, %v1578_v42 }
  0x76   : > { %v588_v52 = vadd.f32 %v556_v34, %v484_v24  ;;  %v436_v12 = vsel %vm400_vm12, %v1557_v22, 0.0  ;;  %vm504_vm13 = vcmp.eq.s32.totalorder %v1489_v30, %v1581_v48  ;;  %vm608_vm14 = vcmp.eq.s32.totalorder %v1489_v30, %v1584_v49 }
  0x77   : > { %1012 = vmatpush3.msra.mxu0 %v677_v50  ;;  %1068 = vmatpush3.msra.mxu1 %v677_v50  ;;  %v468_v29 = vadd.f32 %v436_v12, %v364_v51  ;;  %v540_v53 = vsel %vm504_vm13, %v1569_v41, 0.0  ;;  %v644_v57 = vsel %vm608_vm14, %v1560_v25, 0.0  ;;  %vm343_vm15 = vcmp.eq.s32.totalorder %v1492_v31, %v1554_v21 }
  0x78   : > { %v692_v58 = vadd.f32 %v660_v16, %v588_v52  ;;  %v379_v59 = vsel %vm343_vm15, %v1566_v40, 0.0  ;;  %vm415_vm0 = vcmp.eq.s32.totalorder %v1492_v31, %v1578_v42  ;;  %vm519_vm1 = vcmp.eq.s32.totalorder %v1492_v31, %v1581_v48 }
  0x79   : > { %v572_v30 = vadd.f32 %v540_v53, %v468_v29  ;;  %v451_v17 = vsel %vm415_vm0, %v1557_v22, 0.0  ;;  %v555_v60 = vsel %vm519_vm1, %v1569_v41, 0.0  ;;  %vm623_vm2 = vcmp.eq.s32.totalorder %v1492_v31, %v1584_v49 }
  0x7a   : > { %1013 = vmatprep.subr.mxu0 %v692_v58  ;;  %1053 = vmatprep.subr.mxu1 %v692_v58  ;;  %v483_v13 = vadd.f32 %v451_v17, %v379_v59  ;;  %v659_v61 = vsel %vm623_vm2, %v1560_v25, 0.0  ;;  %vm327_vm3 = vcmp.eq.s32.totalorder %v1495_v32, %v1554_v21  ;;  %vm399_vm4 = vcmp.eq.s32.totalorder %v1495_v32, %v1578_v42 }
  0x7b   : > { %v676_v62 = vadd.f32 %v644_v57, %v572_v30  ;;  %v363_v19 = vsel %vm327_vm3, %v1566_v40, 0.0  ;;  %v435_v1 = vsel %vm399_vm4, %v1557_v22, 0.0  ;;  %vm503_vm5 = vcmp.eq.s32.totalorder %v1495_v32, %v1581_v48 }
  0x7c   : > { %v587_v31 = vadd.f32 %v555_v60, %v483_v13  ;;  %v467_v2 = vadd.f32 %v435_v1, %v363_v19  ;;  %v539_v3 = vsel %vm503_vm5, %v1569_v41, 0.0  ;;  %vm607_vm6 = vcmp.eq.s32.totalorder %v1495_v32, %v1584_v49 }
  0x7d   : > { %1014 = vmatpush3.msra.mxu0 %v676_v62  ;;  %1069 = vmatpush3.msra.mxu1 %v676_v62  ;;  %v643_v4 = vsel %vm607_vm6, %v1560_v25, 0.0  ;;  %vm342_vm7 = vcmp.eq.s32.totalorder %v1498_v33, %v1554_v21  ;;  %vm414_vm8 = vcmp.eq.s32.totalorder %v1498_v33, %v1578_v42  ;;  %vm518_vm9 = vcmp.eq.s32.totalorder %v1498_v33, %v1581_v48 }
  0x7e   : > { %v691_v14 = vadd.f32 %v659_v61, %v587_v31  ;;  %v571_v5 = vadd.f32 %v539_v3, %v467_v2  ;;  %v378_v6 = vsel %vm342_vm7, %v1566_v40, 0.0  ;;  %v450_v23 = vsel %vm414_vm8, %v1557_v22, 0.0 }
  0x7f   : > { %v482_v32 = vadd.f32 %v450_v23, %v378_v6  ;;  %v554_v10 = vsel %vm518_vm9, %v1569_v41, 0.0  ;;  %vm622_vm10 = vcmp.eq.s32.totalorder %v1498_v33, %v1584_v49  ;;  %vm326_vm11 = vcmp.eq.s32.totalorder %v1501_v35, %v1554_v21 }
  0x80   : > { %1015 = vmatprep.subr.mxu0 %v691_v14  ;;  %1054 = vmatprep.subr.mxu1 %v691_v14  ;;  %v675_v11 = vadd.f32 %v643_v4, %v571_v5  ;;  %v658_v18 = vsel %vm622_vm10, %v1560_v25, 0.0  ;;  %v362_v20 = vsel %vm326_vm11, %v1566_v40, 0.0  ;;  %vm398_vm12 = vcmp.eq.s32.totalorder %v1501_v35, %v1578_v42 }
  0x81   : > { %v586_v15 = vadd.f32 %v554_v10, %v482_v32  ;;  %v434_v27 = vsel %vm398_vm12, %v1557_v22, 0.0  ;;  %vm502_vm13 = vcmp.eq.s32.totalorder %v1501_v35, %v1581_v48  ;;  %vm606_vm14 = vcmp.eq.s32.totalorder %v1501_v35, %v1584_v49 }
  0x82   : > { %1016 = vmatpush3.msra.mxu0 %v675_v11  ;;  %1070 = vmatpush3.msra.mxu1 %v675_v11  ;;  %v466_v33 = vadd.f32 %v434_v27, %v362_v20  ;;  %v538_v28 = vsel %vm502_vm13, %v1569_v41, 0.0  ;;  %v642_v24 = vsel %vm606_vm14, %v1560_v25, 0.0  ;;  %vm341_vm15 = vcmp.eq.s32.totalorder %v1506_v36, %v1554_v21 }
  0x83   : > { %v690_v34 = vadd.f32 %v658_v18, %v586_v15  ;;  %v377_v50 = vsel %vm341_vm15, %v1566_v40, 0.0  ;;  %vm413_vm0 = vcmp.eq.s32.totalorder %v1506_v36, %v1578_v42  ;;  %vm517_vm1 = vcmp.eq.s32.totalorder %v1506_v36, %v1581_v48 }
  0x84   : > { %v570_v35 = vadd.f32 %v538_v28, %v466_v33  ;;  %v449_v16 = vsel %vm413_vm0, %v1557_v22, 0.0  ;;  %v553_v51 = vsel %vm517_vm1, %v1569_v41, 0.0  ;;  %vm621_vm2 = vcmp.eq.s32.totalorder %v1506_v36, %v1584_v49 }
  0x85   : > { %1017 = vmatprep.subr.mxu0 %v690_v34  ;;  %1055 = vmatprep.subr.mxu1 %v690_v34  ;;  %v481_v52 = vadd.f32 %v449_v16, %v377_v50  ;;  %v657_v12 = vsel %vm621_vm2, %v1560_v25, 0.0  ;;  %vm325_vm3 = vcmp.eq.s32.totalorder %v1509_v37, %v1554_v21  ;;  %vm397_vm4 = vcmp.eq.s32.totalorder %v1509_v37, %v1578_v42 }
  0x86   : > { %v674_v29 = vadd.f32 %v642_v24, %v570_v35  ;;  %v361_v53 = vsel %vm325_vm3, %v1566_v40, 0.0  ;;  %v433_v57 = vsel %vm397_vm4, %v1557_v22, 0.0  ;;  %vm501_vm5 = vcmp.eq.s32.totalorder %v1509_v37, %v1581_v48 }
  0x87   : > { %v585_v36 = vadd.f32 %v553_v51, %v481_v52  ;;  %v465_v58 = vadd.f32 %v433_v57, %v361_v53  ;;  %v537_v59 = vsel %vm501_vm5, %v1569_v41, 0.0  ;;  %vm605_vm6 = vcmp.eq.s32.totalorder %v1509_v37, %v1584_v49 }
  0x88   : > { %1018 = vmatpush3.msra.mxu0 %v674_v29  ;;  %1071 = vmatpush3.msra.mxu1 %v674_v29  ;;  %v641_v30 = vsel %vm605_vm6, %v1560_v25, 0.0  ;;  %vm340_vm7 = vcmp.eq.s32.totalorder %v1512_v38, %v1554_v21  ;;  %vm412_vm8 = vcmp.eq.s32.totalorder %v1512_v38, %v1578_v42  ;;  %vm516_vm9 = vcmp.eq.s32.totalorder %v1512_v38, %v1581_v48 }
  0x89   : > { %v689_v17 = vadd.f32 %v657_v12, %v585_v36  ;;  %v569_v60 = vadd.f32 %v537_v59, %v465_v58  ;;  %v376_v13 = vsel %vm340_vm7, %v1566_v40, 0.0  ;;  %v448_v61 = vsel %vm412_vm8, %v1557_v22, 0.0 }
  0x8a   : > { %v480_v37 = vadd.f32 %v448_v61, %v376_v13  ;;  %v552_v62 = vsel %vm516_vm9, %v1569_v41, 0.0  ;;  %vm620_vm10 = vcmp.eq.s32.totalorder %v1512_v38, %v1584_v49  ;;  %vm324_vm11 = vcmp.eq.s32.totalorder %v1515_v39, %v1554_v21 }
  0x8b   : > { %1019 = vmatprep.subr.mxu0 %v689_v17  ;;  %1056 = vmatprep.subr.mxu1 %v689_v17  ;;  %v673_v19 = vadd.f32 %v641_v30, %v569_v60  ;;  %v656_v1 = vsel %vm620_vm10, %v1560_v25, 0.0  ;;  %v360_v31 = vsel %vm324_vm11, %v1566_v40, 0.0  ;;  %vm396_vm12 = vcmp.eq.s32.totalorder %v1515_v39, %v1578_v42 }
  0x8c   : > { %v584_v2 = vadd.f32 %v552_v62, %v480_v37  ;;  %v432_v3 = vsel %vm396_vm12, %v1557_v22, 0.0  ;;  %vm500_vm13 = vcmp.eq.s32.totalorder %v1515_v39, %v1581_v48  ;;  %vm604_vm14 = vcmp.eq.s32.totalorder %v1515_v39, %v1584_v49 }
  0x8d   : > { %1020 = vmatpush3.msra.mxu0 %v673_v19  ;;  %1072 = vmatpush3.msra.mxu1 %v673_v19  ;;  %v464_v38 = vadd.f32 %v432_v3, %v360_v31  ;;  %v536_v4 = vsel %vm500_vm13, %v1569_v41, 0.0  ;;  %v640_v14 = vsel %vm604_vm14, %v1560_v25, 0.0  ;;  %vm339_vm15 = vcmp.eq.s32.totalorder %v1518_v43, %v1554_v21 }
  0x8e   : > { %v688_v5 = vadd.f32 %v656_v1, %v584_v2  ;;  %v375_v6 = vsel %vm339_vm15, %v1566_v40, 0.0  ;;  %vm411_vm0 = vcmp.eq.s32.totalorder %v1518_v43, %v1578_v42  ;;  %vm515_vm1 = vcmp.eq.s32.totalorder %v1518_v43, %v1581_v48 }
  0x8f   : > { %v568_v39 = vadd.f32 %v536_v4, %v464_v38  ;;  %v447_v23 = vsel %vm411_vm0, %v1557_v22, 0.0  ;;  %v551_v32 = vsel %vm515_vm1, %v1569_v41, 0.0  ;;  %vm619_vm2 = vcmp.eq.s32.totalorder %v1518_v43, %v1584_v49 }
  0x90   : > { %1021 = vmatprep.subr.mxu0 %v688_v5  ;;  %1057 = vmatprep.subr.mxu1 %v688_v5  ;;  %v479_v10 = vadd.f32 %v447_v23, %v375_v6  ;;  %v655_v11 = vsel %vm619_vm2, %v1560_v25, 0.0  ;;  %vm323_vm3 = vcmp.eq.s32.totalorder %v1521_v44, %v1554_v21  ;;  %vm395_vm4 = vcmp.eq.s32.totalorder %v1521_v44, %v1578_v42 }
  0x91   : > { %v672_v18 = vadd.f32 %v640_v14, %v568_v39  ;;  %v359_v20 = vsel %vm323_vm3, %v1566_v40, 0.0  ;;  %v431_v15 = vsel %vm395_vm4, %v1557_v22, 0.0  ;;  %vm499_vm5 = vcmp.eq.s32.totalorder %v1521_v44, %v1581_v48 }
  0x92   : > { %v583_v43 = vadd.f32 %v551_v32, %v479_v10  ;;  %v463_v27 = vadd.f32 %v431_v15, %v359_v20  ;;  %v535_v33 = vsel %vm499_vm5, %v1569_v41, 0.0  ;;  %vm603_vm6 = vcmp.eq.s32.totalorder %v1521_v44, %v1584_v49 }
  0x93   : > { %1022 = vmatpush3.msra.mxu0 %v672_v18  ;;  %1073 = vmatpush3.msra.mxu1 %v672_v18  ;;  %v639_v28 = vsel %vm603_vm6, %v1560_v25, 0.0  ;;  %vm338_vm7 = vcmp.eq.s32.totalorder %v1524_v45, %v1554_v21  ;;  %vm410_vm8 = vcmp.eq.s32.totalorder %v1524_v45, %v1578_v42  ;;  %vm514_vm9 = vcmp.eq.s32.totalorder %v1524_v45, %v1581_v48 }
  0x94   : > { %v687_v24 = vadd.f32 %v655_v11, %v583_v43  ;;  %v567_v34 = vadd.f32 %v535_v33, %v463_v27  ;;  %v374_v50 = vsel %vm338_vm7, %v1566_v40, 0.0  ;;  %v446_v35 = vsel %vm410_vm8, %v1557_v22, 0.0 }
  0x95   : > { %v478_v44 = vadd.f32 %v446_v35, %v374_v50  ;;  %v550_v16 = vsel %vm514_vm9, %v1569_v41, 0.0  ;;  %vm618_vm10 = vcmp.eq.s32.totalorder %v1524_v45, %v1584_v49  ;;  %vm322_vm11 = vcmp.eq.s32.totalorder %v1527_v46, %v1554_v21 }
  0x96   : > { %1023 = vmatprep.subr.mxu0 %v687_v24  ;;  %1058 = vmatprep.subr.mxu1 %v687_v24  ;;  %v671_v51 = vadd.f32 %v639_v28, %v567_v34  ;;  %v654_v52 = vsel %vm618_vm10, %v1560_v25, 0.0  ;;  %v358_v12 = vsel %vm322_vm11, %v1566_v40, 0.0  ;;  %vm394_vm12 = vcmp.eq.s32.totalorder %v1527_v46, %v1578_v42 }
  0x97   : > { %v582_v29 = vadd.f32 %v550_v16, %v478_v44  ;;  %v430_v53 = vsel %vm394_vm12, %v1557_v22, 0.0  ;;  %vm498_vm13 = vcmp.eq.s32.totalorder %v1527_v46, %v1581_v48  ;;  %vm602_vm14 = vcmp.eq.s32.totalorder %v1527_v46, %v1584_v49 }
  0x98   : > { %1024 = vmatpush3.msra.mxu0 %v671_v51  ;;  %1074 = vmatpush3.msra.mxu1 %v671_v51  ;;  %v462_v45 = vadd.f32 %v430_v53, %v358_v12  ;;  %v534_v57 = vsel %vm498_vm13, %v1569_v41, 0.0  ;;  %v638_v36 = vsel %vm602_vm14, %v1560_v25, 0.0  ;;  %vm337_vm15 = vcmp.eq.s32.totalorder %v1530_v47, %v1554_v21 }
  0x99   : > { %v686_v58 = vadd.f32 %v654_v52, %v582_v29  ;;  %v373_v59 = vsel %vm337_vm15, %v1566_v40, 0.0  ;;  %vm409_vm0 = vcmp.eq.s32.totalorder %v1530_v47, %v1578_v42  ;;  %vm513_vm1 = vcmp.eq.s32.totalorder %v1530_v47, %v1581_v48 }
  0x9a   : > { %v566_v46 = vadd.f32 %v534_v57, %v462_v45  ;;  %v445_v30 = vsel %vm409_vm0, %v1557_v22, 0.0  ;;  %v549_v17 = vsel %vm513_vm1, %v1569_v41, 0.0  ;;  %vm617_vm2 = vcmp.eq.s32.totalorder %v1530_v47, %v1584_v49 }
  0x9b   : > { %1025 = vmatprep.subr.mxu0 %v686_v58  ;;  %1059 = vmatprep.subr.mxu1 %v686_v58  ;;  %v477_v60 = vadd.f32 %v445_v30, %v373_v59  ;;  %v653_v13 = vsel %vm617_vm2, %v1560_v25, 0.0  ;;  %vm321_vm3 = vcmp.eq.s32.totalorder %v1533_v54, %v1554_v21  ;;  %vm393_vm4 = vcmp.eq.s32.totalorder %v1533_v54, %v1578_v42 }
  0x9c   : > { %v670_v61 = vadd.f32 %v638_v36, %v566_v46  ;;  %v357_v37 = vsel %vm321_vm3, %v1566_v40, 0.0  ;;  %v429_v62 = vsel %vm393_vm4, %v1557_v22, 0.0  ;;  %vm497_vm5 = vcmp.eq.s32.totalorder %v1533_v54, %v1581_v48 }
  0x9d   : > { %v581_v47 = vadd.f32 %v549_v17, %v477_v60  ;;  %v461_v19 = vadd.f32 %v429_v62, %v357_v37  ;;  %v533_v1 = vsel %vm497_vm5, %v1569_v41, 0.0  ;;  %vm601_vm6 = vcmp.eq.s32.totalorder %v1533_v54, %v1584_v49 }
  0x9e   : > { %1026 = vmatpush3.msra.mxu0 %v670_v61  ;;  %1075 = vmatpush3.msra.mxu1 %v670_v61  ;;  %v637_v31 = vsel %vm601_vm6, %v1560_v25, 0.0  ;;  %vm336_vm7 = vcmp.eq.s32.totalorder %v1536_v55, %v1554_v21  ;;  %vm408_vm8 = vcmp.eq.s32.totalorder %v1536_v55, %v1578_v42  ;;  %vm512_vm9 = vcmp.eq.s32.totalorder %v1536_v55, %v1581_v48 }
  0x9f   : > { %v685_v2 = vadd.f32 %v653_v13, %v581_v47  ;;  %v565_v3 = vadd.f32 %v533_v1, %v461_v19  ;;  %v372_v38 = vsel %vm336_vm7, %v1566_v40, 0.0  ;;  %v444_v4 = vsel %vm408_vm8, %v1557_v22, 0.0 }
  0xa0   : > { %v476_v54 = vadd.f32 %v444_v4, %v372_v38  ;;  %v548_v14 = vsel %vm512_vm9, %v1569_v41, 0.0  ;;  %vm616_vm10 = vcmp.eq.s32.totalorder %v1536_v55, %v1584_v49  ;;  %vm320_vm11 = vcmp.eq.s32.totalorder %v1539_v56, %v1554_v21  ;;  %v736_v38 = vld [vmem:[%s1444_s27 + $0x38] sm:$0xff] }
  0xa1   : > { %1027 = vmatprep.subr.mxu0 %v685_v2  ;;  %1060 = vmatprep.subr.mxu1 %v685_v2  ;;  %v669_v5 = vadd.f32 %v637_v31, %v565_v3  ;;  %v652_v6 = vsel %vm616_vm10, %v1560_v25, 0.0  ;;  %v356_v39 = vsel %vm320_vm11, %v1566_v40, 0.0  ;;  %vm392_vm12 = vcmp.eq.s32.totalorder %v1539_v56, %v1578_v42  ;;  %v733_v2 = vld [vmem:[%s1444_s27 + $0x20] sm:$0xff]  ;;  %v732_v3 = vld [vmem:[%s1444_s27 + $0x18] sm:$0xff] }
  0xa2   : > { %v580_v23 = vadd.f32 %v548_v14, %v476_v54  ;;  %v428_v32 = vsel %vm392_vm12, %v1557_v22, 0.0  ;;  %vm496_vm13 = vcmp.eq.s32.totalorder %v1539_v56, %v1581_v48  ;;  %vm600_vm14 = vcmp.eq.s32.totalorder %v1539_v56, %v1584_v49 }
  0xa3   : > { %1028 = vmatpush3.msra.mxu0 %v669_v5  ;;  %1076 = vmatpush3.msra.mxu1 %v669_v5  ;;  %v460_v55 = vadd.f32 %v428_v32, %v356_v39  ;;  %v532_v10 = vsel %vm496_vm13, %v1569_v41, 0.0  ;;  %v636_v11 = vsel %vm600_vm14, %v1560_v25, 0.0  ;;  %vm335_vm15 = vcmp.eq.s32.totalorder %v1542_v63, %v1554_v21 }
  0xa4   : > { %v684_v18 = vadd.f32 %v652_v6, %v580_v23  ;;  %v371_v20 = vsel %vm335_vm15, %v1566_v40, 0.0  ;;  %vm407_vm0 = vcmp.eq.s32.totalorder %v1542_v63, %v1578_v42  ;;  %vm511_vm1 = vcmp.eq.s32.totalorder %v1542_v63, %v1581_v48 }
  0xa5   : > { %v564_v56 = vadd.f32 %v532_v10, %v460_v55  ;;  %v443_v15 = vsel %vm407_vm0, %v1557_v22, 0.0  ;;  %v547_v43 = vsel %vm511_vm1, %v1569_v41, 0.0  ;;  %vm615_vm2 = vcmp.eq.s32.totalorder %v1542_v63, %v1584_v49 }
  0xa6   : > { %1029 = vmatprep.subr.mxu0 %v684_v18  ;;  %1061 = vmatprep.subr.mxu1 %v684_v18  ;;  %v475_v27 = vadd.f32 %v443_v15, %v371_v20  ;;  %v651_v33 = vsel %vm615_vm2, %v1560_v25, 0.0  ;;  %vm319_vm3 = vcmp.eq.s32.totalorder %v1545_v0, %v1554_v21  ;;  %vm391_vm4 = vcmp.eq.s32.totalorder %v1545_v0, %v1578_v42 }
  0xa7   : > { %v668_v28 = vadd.f32 %v636_v11, %v564_v56  ;;  %v355_v24 = vsel %vm319_vm3, %v1566_v40, 0.0  ;;  %v427_v34 = vsel %vm391_vm4, %v1557_v22, 0.0  ;;  %vm495_vm5 = vcmp.eq.s32.totalorder %v1545_v0, %v1581_v48 }
  0xa8   : > { %v579_v63 = vadd.f32 %v547_v43, %v475_v27  ;;  %v459_v50 = vadd.f32 %v427_v34, %v355_v24  ;;  %v531_v35 = vsel %vm495_vm5, %v1569_v41, 0.0  ;;  %vm599_vm6 = vcmp.eq.s32.totalorder %v1545_v0, %v1584_v49 }
  0xa9   : > { %1030 = vmatpush3.msra.mxu0 %v668_v28  ;;  %1077 = vmatpush3.msra.mxu1 %v668_v28  ;;  %v635_v44 = vsel %vm599_vm6, %v1560_v25, 0.0  ;;  %vm334_vm7 = vcmp.eq.s32.totalorder %v1548_v7, %v1554_v21  ;;  %vm406_vm8 = vcmp.eq.s32.totalorder %v1548_v7, %v1578_v42  ;;  %vm510_vm9 = vcmp.eq.s32.totalorder %v1548_v7, %v1581_v48 }
  0xaa   : > { %v683_v16 = vadd.f32 %v651_v33, %v579_v63  ;;  %v563_v51 = vadd.f32 %v531_v35, %v459_v50  ;;  %v370_v52 = vsel %vm334_vm7, %v1566_v40, 0.0  ;;  %v442_v12 = vsel %vm406_vm8, %v1557_v22, 0.0 }
  0xab   : > { %v474_v0 = vadd.f32 %v442_v12, %v370_v52  ;;  %v546_v29 = vsel %vm510_vm9, %v1569_v41, 0.0  ;;  %vm614_vm10 = vcmp.eq.s32.totalorder %v1548_v7, %v1584_v49  ;;  %vm318_vm11 = vcmp.eq.s32.totalorder %v1551_v8, %v1554_v21 }
  0xac   : > { %1031 = vmatprep.subr.mxu0 %v683_v16  ;;  %1062 = vmatprep.subr.mxu1 %v683_v16  ;;  %v667_v53 = vadd.f32 %v635_v44, %v563_v51  ;;  %v650_v45 = vsel %vm614_vm10, %v1560_v25, 0.0  ;;  %v354_v57 = vsel %vm318_vm11, %v1566_v40, 0.0  ;;  %vm390_vm12 = vcmp.eq.s32.totalorder %v1551_v8, %v1578_v42 }
  0xad   : > { %v578_v36 = vadd.f32 %v546_v29, %v474_v0  ;;  %v426_v58 = vsel %vm390_vm12, %v1557_v22, 0.0  ;;  %vm494_vm13 = vcmp.eq.s32.totalorder %v1551_v8, %v1581_v48  ;;  %vm598_vm14 = vcmp.eq.s32.totalorder %v1551_v8, %v1584_v49 }
  0xae   : > { %1032 = vmatpush3.msra.mxu0 %v667_v53  ;;  %1078 = vmatpush3.msra.mxu1 %v667_v53  ;;  %v458_v7 = vadd.f32 %v426_v58, %v354_v57  ;;  %v530_v59 = vsel %vm494_vm13, %v1569_v41, 0.0  ;;  %v634_v46 = vsel %vm598_vm14, %v1560_v25, 0.0  ;;  %vm333_vm15 = vcmp.eq.s32.totalorder %v1563_v26, %v1554_v21 }
  0xaf   : > { %v682_v30 = vadd.f32 %v650_v45, %v578_v36  ;;  %v369_v17 = vsel %vm333_vm15, %v1566_v40, 0.0  ;;  %vm405_vm0 = vcmp.eq.s32.totalorder %v1563_v26, %v1578_v42  ;;  %vm509_vm1 = vcmp.eq.s32.totalorder %v1563_v26, %v1581_v48 }
  0xb0   : > { %v562_v8 = vadd.f32 %v530_v59, %v458_v7  ;;  %v441_v60 = vsel %vm405_vm0, %v1557_v22, 0.0  ;;  %v545_v13 = vsel %vm509_vm1, %v1569_v41, 0.0  ;;  %vm613_vm2 = vcmp.eq.s32.totalorder %v1563_v26, %v1584_v49 }
  0xb1   : > { %1033 = vmatprep.subr.mxu0 %v682_v30  ;;  %1063 = vmatprep.subr.mxu1 %v682_v30  ;;  %v473_v61 = vadd.f32 %v441_v60, %v369_v17  ;;  %v649_v37 = vsel %vm613_vm2, %v1560_v25, 0.0  ;;  %vm317_vm3 = vcmp.eq.s32.totalorder %v1452_v9, %v1554_v21  ;;  %vm389_vm4 = vcmp.eq.s32.totalorder %v1452_v9, %v1578_v42 }
  0xb2   : > { %v666_v62 = vadd.f32 %v634_v46, %v562_v8  ;;  %v353_v47 = vsel %vm317_vm3, %v1566_v40, 0.0  ;;  %v425_v19 = vsel %vm389_vm4, %v1557_v22, 0.0  ;;  %vm493_vm5 = vcmp.eq.s32.totalorder %v1452_v9, %v1581_v48  ;;  %v729_v48 = vld [vmem:[%s1444_s27] sm:$0xff] }
  0xb3   : > { %v577_v26 = vadd.f32 %v545_v13, %v473_v61  ;;  %v457_v1 = vadd.f32 %v425_v19, %v353_v47  ;;  %v529_v31 = vsel %vm493_vm5, %v1569_v41, 0.0  ;;  %vm597_vm6 = vcmp.eq.s32.totalorder %v1452_v9, %v1584_v49  ;;  %v731_v9 = vld [vmem:[%s1444_s27 + $0x10] sm:$0xff] }
  0xb4   : > { %1034 = vmatpush3.msra.mxu0 %v666_v62  ;;  %1079 = vmatpush3.msra.mxu1 %v666_v62  ;;  %v633_v21 = vsel %vm597_vm6, %v1560_v25, 0.0  ;;  %v735_v25 = vld [vmem:[%s1444_s27 + $0x30] sm:$0xff] }
  0xb5   : > { %v681_v40 = vadd.f32 %v649_v37, %v577_v26  ;;  %v561_v22 = vadd.f32 %v529_v31, %v457_v1 }
  0xb7   : > { %1035 = vmatprep.subr.mxu0 %v681_v40  ;;  %1064 = vmatprep.subr.mxu1 %v681_v40  ;;  %v665_v42 = vadd.f32 %v633_v21, %v561_v22 }
  0xb9   : > { %1036 = vmatpush3.msra.mxu0 %v665_v42  ;;  %1080 = vmatpush3.msra.mxu1 %v665_v42 }
  0xba   : > { %834 = vmatmul.mubr.f32.vlgmr.msra.gmra.mxu0 %v729_v48  ;;  %844 = vmatmul.mubr.f32.vlgmr.msra.gmra.mxu1 %v733_v2 }
  0xbb   : > { %838 = vmatprep.mubr.f32.mxu0 %v732_v3  ;;  %848 = vmatprep.mubr.f32.mxu1 %v736_v38 }
  0xbe   : > { %839 = vmatmul.mubr.f32.gmra.mxu0 %v731_v9  ;;  %849 = vmatmul.mubr.f32.gmra.mxu1 %v735_v25 }
 0x17a   : > { %v1037_v41 = vpop.f32.mrf.mxu0  ;;  %v1043_v49 = vpop.f32.mrf.mxu1 }
 0x17c   : > { %v1038_v4 = vpop.f32.mrf.mxu0  ;;  %v1044_v54 = vpop.f32.mrf.mxu1 }
 0x17d   : > { %v1039_v14 = vadd.f32 %v1038_v4, %v1037_v41  ;;  %v1045_v5 = vadd.f32 %v1044_v54, %v1043_v49 }
 0x17e   : > { %v1040_v6 = vpop.f32.mrf.mxu0  ;;  %v1046_v39 = vpop.f32.mrf.mxu1 }
 0x17f   : > { %854 = vst [vmem:[%s217_s28] sm:$0xff] %v1039_v14  ;;  %856 = vst [vmem:[%s217_s28 + $0x10] sm:$0xff] %v1045_v5 }
 0x180   : > { %v1041_v23 = vpop.f32.mrf.mxu0  ;;  %v1047_v32 = vpop.f32.mrf.mxu1 }
 0x181   : > { %v1042_v55 = vadd.f32 %v1041_v23, %v1040_v6  ;;  %v1048_v10 = vadd.f32 %v1047_v32, %v1046_v39 }
 0x183   : > { %855 = vst [vmem:[%s217_s28 + $0x8] sm:$0xff] %v1042_v55  ;;  %857 = vst [vmem:[%s217_s28 + $0x18] sm:$0xff] %v1048_v10 }
 0x184   : > { %1227 = shalt.err (!%p1224_p6)
}
 0x185   : > { %s1228_s19 = scalar_lea.hbm %s1983_s30, 512  ;;  %s1232_s5 = scalar_lea.hbm %s2033_s2, 1024 }
 0x186   : > { %p1229_p7 = scmp.ne.s32.totalorder %s1983_s30, %s1228_s19  ;;  %p1233_p4 = scmp.lt.s32.totalorder %s1983_s30, %s2033_s2 }
 0x187   : > { %p1234_p10 = scmp.lt.s32.totalorder %s1232_s5, %s1228_s19 }
 0x188   : > { %p1230_p1 = pnand %p1229_p7, %p1375_p9 }
 0x189   : > { %p1235_p8 = por %p1234_p10, %p1233_p4 }
 0x18a   : > { %p1231_p2 = pneg %p1230_p1 }
 0x18c   : > { %p1236_p0 = pnand %p1235_p8, %p1231_p2 }
 0x18e   : > { %1239 = shalt.err (!%p1236_p0)
}
 0x18f   : > { %s1307_s21 = smov 128   ;;  %s1308_s28 = smov 8  }
 0x190   : > { %1089 = dma.vmem_to_hbm [thread:$0]  (%p1375_p9), %s1978_s29, 512, %s1983_s30, %s859_s12, %s1307_s21, %s1307_s21, %s1308_s28  }
 0x191 PF: > { %s889_s3 = sand.u32 1, %s1278_s9   ;;  %p2042_p3 = scmp.ge.s32.totalorder %s1298_s14, 2 }
 0x192   : > { %s890_s7 = scalar_lea.sflag [#allocation5], %s889_s3 }
 0x193   : > { %p1099_p13 = pnand %p2042_p3, %p1382_p11 }
 0x195   : > { %p1100_p5 = pneg %p1099_p13 }
 0x197   : > { %1273 = dma.done.wait (%p1100_p5), %s890_s7, 512  }
 0x198   : > { %1275 = vsyncadd (%p1100_p5), %s890_s7, 4294966784  ;;  %s21_s14 = sadd.s32 1, %s1298_s14   ;;  %s2043_s9 = smov %s1282_s10 }
 0x199   : > { %p18_p12 = scmp.ge.s32.totalorder %s21_s14, 4   ;;  %s2044_s10 = smov %s1286_s11 }
 0x19a   : > { %s2045_s11 = smov %s1380_s23  ;;  %s2046_s12 = smov %s1294_s13 }
 0x19b   : > { %s2047_s13 = smov %s2049_s17  ;;  %20 = sbr.rel (!%p18_p12) target bundleno = 8 (0x8), region = 90 }
 0x1a0   :  { %895 = vsyncpa [#allocation4], 1 }
 0x1a1   :  { %897 = vsyncpa [#allocation4 + $0x1], 1 }
 0x1a2   :  { %898 = vsyncpa [#allocation7], 1 }
 0x1a3   :  { %900 = vsyncpa [#allocation7 + $0x1], 1 }
 0x1a4   :  { %901 = vsyncpa [#allocation5], 1 }
 0x1a5   :  { %903 = vsyncpa [#allocation5 + $0x1], 1 }

</bundles_post_ra>
